<compile_context>
chip_gen: v7x
topology: tpu7x:2x2x1
jax: 0.10.0
libtpu: 0.0.40
codegen_flags: <defaults>
</compile_context>

<pallas_src>
import math
import numpy as np
import jax
import jax.numpy as jnp
from jax import lax
from jax.experimental import pallas as pl
from jax.experimental.pallas import tpu as pltpu  # noqa: F401  (kept for TPU-specific tuning hooks)

B, T, C = 2, 8, 32
BT = B * T                       # 16 rows after folding batch into sublanes
N_HEAD = 4
HEAD_DIM = C // N_HEAD           # 8
BLOCK_SIZE = 16                  # RoPE tables built for block_size, sliced to T
ROPE_THETA = 10000.0
NEG_INF = -1e30
SCALE = 1.0 / math.sqrt(HEAD_DIM)

# ---- constant-slab (lane width C) row offsets ----
R_WFC2 = 0                        # (4C, C)  w_fc2
R_WPROJ = 4 * C                   # (C, C)   attention output projection
R_LN1G = R_WPROJ + C
R_LN1B = R_LN1G + BT
R_LN2G = R_LN1B + BT
R_LN2B = R_LN2G + BT
R_BPROJ = R_LN2B + BT
R_BFC2 = R_BPROJ + BT
R_M64 = R_BFC2 + BT               # (4*BT, C) block-diagonal head selector mask
CSLAB_ROWS = R_M64 + N_HEAD * BT  # 320


def _layernorm(x, g, b, eps=1e-5):
    mu = jnp.mean(x, axis=-1, keepdims=True)
    var = jnp.mean((x - mu) ** 2, axis=-1, keepdims=True)
    return (x - mu) * lax.rsqrt(var + eps) * g + b


def _gelu_tanh(x):
    c = math.sqrt(2.0 / math.pi)
    return 0.5 * x * (1.0 + jnp.tanh(c * (x + 0.044715 * x * x * x)))


def block_kernel(x_ref, wqkv_ref, wfc_ref, cslab_ref, rope_ref, mask_ref, out_ref):
    x = x_ref[...]                                          # (BT, C)

    # ---- constant-slab unpack (all row-broadcast vectors pre-broadcast host-side) ----
    w_fc2 = cslab_ref[R_WFC2:R_WFC2 + 4 * C, :]             # (4C, C)
    w_proj = cslab_ref[R_WPROJ:R_WPROJ + C, :]              # (C, C)
    ln1_g = cslab_ref[R_LN1G:R_LN1G + BT, :]
    ln1_b = cslab_ref[R_LN1B:R_LN1B + BT, :]
    ln2_g = cslab_ref[R_LN2G:R_LN2G + BT, :]
    ln2_b = cslab_ref[R_LN2B:R_LN2B + BT, :]
    b_proj = cslab_ref[R_BPROJ:R_BPROJ + BT, :]
    b_fc2 = cslab_ref[R_BFC2:R_BFC2 + BT, :]
    m64 = cslab_ref[R_M64:R_M64 + N_HEAD * BT, :]           # (64, C) block-diag head selector

    w_qkv = wqkv_ref[0:C, :]                                # (C, 5C) [Wq|Wk|Wq_sw|Wk_sw|Wv]
    b_qkv = wqkv_ref[C:C + BT, :]                           # (BT, 5C) pre-broadcast bias
    w_fc = wfc_ref[0:C, :]                                  # (C, 4C)
    b_fc = wfc_ref[C:C + BT, :]                             # (BT, 4C)
    cos_qk = rope_ref[0:BT, :]                              # (BT, 2C)
    sin_qk = rope_ref[BT:2 * BT, :]                         # (BT, 2C)  signed (-,+,-,+,...)
    mask64 = mask_ref[...]                                  # (64, BT) additive causal+batch mask

    # ---------------- attention branch ----------------
    h = _layernorm(x, ln1_g, ln1_b)
    # Single fused matmul: Q, K, V plus pair-swapped Q/K columns for RoPE.
    qkv = jnp.dot(h, w_qkv, preferred_element_type=jnp.float32) + b_qkv    # (BT, 5C)

    # RoPE (interleaved pairs): out = qk*cos + pair_swap(qk)*signed_sin.
    # pair_swap was folded into the weight columns [2C:4C] host-side -> pure VPU here.
    qk = qkv[:, 0:2 * C] * cos_qk + qkv[:, 2 * C:4 * C] * sin_qk           # (BT, 2C)
    q = qk[:, 0:C]
    k = qk[:, C:2 * C]
    v = qkv[:, 4 * C:5 * C]                                                # (BT, C)

    # All-head scores in ONE MXU push: replicate q along sublanes (one copy per head),
    # block-diagonal lane mask restricts each sublane-block to its own head's lanes.
    q_tall = jnp.concatenate([q] * N_HEAD, axis=0) * m64                   # (4BT, C)
    # 'td,sd->ts' contraction -> a single implicit K transpose (vs. 4 per-head ones).
    s_all = lax.dot_general(q_tall, k, (((1,), (1,)), ((), ())),
                            preferred_element_type=jnp.float32)            # (4BT, BT)
    s_all = s_all * SCALE + mask64

    # One stacked softmax over all heads; exact divide for parity with the reference.
    s_all = s_all - jnp.max(s_all, axis=-1, keepdims=True)
    e = jnp.exp(s_all)
    p_all = e / jnp.sum(e, axis=-1, keepdims=True)                         # (4BT, BT)

    # All-head (att @ V) in ONE push; block-diag select; fold heads; one full projection.
    y_full = jnp.dot(p_all, v, preferred_element_type=jnp.float32) * m64   # (4BT, C)
    y = y_full[0:BT]
    for hi in range(1, N_HEAD):
        y = y + y_full[hi * BT:(hi + 1) * BT]                              # (BT, C)
    attn = jnp.dot(y, w_proj, preferred_element_type=jnp.float32) + b_proj
    # TODO(synk): attn_dropout / resid_dropout / mlp dropout are no-ops (dropout=0.0, eval).
    x1 = x + attn

    # ---------------- MLP branch ----------------
    h2 = _layernorm(x1, ln2_g, ln2_b)
    f = jnp.dot(h2, w_fc, preferred_element_type=jnp.float32) + b_fc
    f = _gelu_tanh(f)
    m = jnp.dot(f, w_fc2, preferred_element_type=jnp.float32) + b_fc2
    out_ref[...] = (x1 + m).astype(out_ref.dtype)


# ---------------------------------------------------------------------------
# Host-side parameter construction / packing
# ---------------------------------------------------------------------------
def make_params(key):
    ks = jax.random.split(key, 12)
    std = 0.02
    n = lambda k, shape: std * jax.random.normal(k, shape, jnp.float32)
    return dict(
        ln1_g=1.0 + n(ks[0], (C,)), ln1_b=n(ks[1], (C,)),
        ln2_g=1.0 + n(ks[2], (C,)), ln2_b=n(ks[3], (C,)),
        w_attn=n(ks[4], (C, 3 * C)),      # x @ W layout (in, out)
        b_attn=n(ks[5], (3 * C,)),
        w_proj=n(ks[6], (C, C)), b_proj=n(ks[7], (C,)),
        w_fc=n(ks[8], (C, 4 * C)), b_fc=n(ks[9], (4 * C,)),
        w_fc2=n(ks[10], (4 * C, C)), b_fc2=n(ks[11], (C,)),
    )


def precompute_rope_tables():
    # Matches precompute_freqs_cis (built for BLOCK_SIZE, sliced to T).
    inv = 1.0 / (ROPE_THETA ** (np.arange(0, HEAD_DIM, 2)[: HEAD_DIM // 2] / HEAD_DIM))
    t = np.arange(BLOCK_SIZE)
    freqs = np.outer(t, inv)                                  # (block_size, hd/2)
    cos = np.cos(freqs)[:T].astype(np.float32)                # (T, hd/2)
    sin = np.sin(freqs)[:T].astype(np.float32)

    cos_full = np.repeat(cos, 2, axis=1)                      # (T, hd) [c0,c0,c1,c1,...]
    sin_full = np.repeat(sin, 2, axis=1)
    sign = np.tile(np.array([-1.0, 1.0], np.float32), HEAD_DIM // 2)
    sin_signed = sin_full * sign                               # even lane -sin, odd +sin

    tile_bt = lambda a: np.tile(np.tile(a, (1, N_HEAD)), (B, 1))   # -> (BT, C)
    return tile_bt(cos_full), tile_bt(sin_signed), jnp.asarray(cos), jnp.asarray(sin)


def build_mask64():
    # Additive mask over batch-folded (BT, BT) scores, tiled once per head along
    # sublanes -> (4*BT, BT). Allowed iff same batch element AND key pos <= query pos.
    idx = np.arange(BT)
    same_batch = (idx[:, None] // T) == (idx[None, :] // T)
    causal = idx[None, :] <= idx[:, None]
    m16 = np.where(same_batch & causal, 0.0, NEG_INF).astype(np.float32)
    return jnp.asarray(np.tile(m16, (N_HEAD, 1)))


def pack_inputs(p, cos32, sin32_signed):
    perm = np.arange(C).reshape(-1, 2)[:, ::-1].reshape(-1)      # pair swap permutation
    w = np.asarray(p['w_attn'], np.float32)
    b = np.asarray(p['b_attn'], np.float32)
    wq, wk, wv = w[:, :C], w[:, C:2 * C], w[:, 2 * C:]
    bq, bk, bv = b[:C], b[C:2 * C], b[2 * C:]
    w_big = np.concatenate([wq, wk, wq[:, perm], wk[:, perm], wv], axis=1)   # (C, 5C)
    b_big = np.concatenate([bq, bk, bq[perm], bk[perm], bv])                 # (5C,)
    wqkv_slab = np.concatenate([w_big, np.tile(b_big, (BT, 1))], axis=0)     # (C+BT, 5C)

    wfc_slab = np.concatenate([np.asarray(p['w_fc'], np.float32),
                               np.tile(np.asarray(p['b_fc'], np.float32), (BT, 1))],
                              axis=0)                                        # (C+BT, 4C)

    bc = lambda v_: np.tile(np.asarray(v_, np.float32)[None, :], (BT, 1))    # (BT, C)
    m64 = np.zeros((N_HEAD * BT, C), np.float32)
    for h in range(N_HEAD):
        m64[h * BT:(h + 1) * BT, h * HEAD_DIM:(h + 1) * HEAD_DIM] = 1.0
    cslab = np.concatenate(
        [np.asarray(p['w_fc2'], np.float32), np.asarray(p['w_proj'], np.float32),
         bc(p['ln1_g']), bc(p['ln1_b']), bc(p['ln2_g']), bc(p['ln2_b']),
         bc(p['b_proj']), bc(p['b_fc2']), m64], axis=0)
    assert cslab.shape == (CSLAB_ROWS, C)

    rope_tab = np.concatenate([np.tile(cos32, (1, 2)),
                               np.tile(sin32_signed, (1, 2))], axis=0)       # (2*BT, 2C)

    return (jnp.asarray(wqkv_slab), jnp.asarray(wfc_slab),
            jnp.asarray(cslab), jnp.asarray(rope_tab))


@jax.jit
def block_forward(x, wqkv_slab, wfc_slab, cslab, rope_tab, mask64):
    x2 = x.reshape(BT, C)                        # fold batch into sublane rows (free)
    out = pl.pallas_call(
        block_kernel,
        out_shape=jax.ShapeDtypeStruct((BT, C), jnp.float32),
    )(x2, wqkv_slab, wfc_slab, cslab, rope_tab, mask64)
    return out.reshape(B, T, C)


# ---------------------------------------------------------------------------
# Pure-JAX reference (mirrors the PyTorch Block forward) for verification
# ---------------------------------------------------------------------------
def ref_block(x, p, cos, sin):
    def ln(v, g, b):
        mu = v.mean(-1, keepdims=True)
        var = ((v - mu) ** 2).mean(-1, keepdims=True)
        return (v - mu) / jnp.sqrt(var + 1e-5) * g + b

    h = ln(x, p['ln1_g'], p['ln1_b'])
    qkv = h @ p['w_attn'] + p['b_attn']
    q, k, v = jnp.split(qkv, 3, axis=-1)
    heads = lambda t: t.reshape(B, T, N_HEAD, HEAD_DIM).transpose(0, 2, 1, 3)
    q, k, v = heads(q), heads(k), heads(v)

    def rope(t):
        tp = t.reshape(B, N_HEAD, T, HEAD_DIM // 2, 2)
        x0, x1 = tp[..., 0], tp[..., 1]
        c, s = cos[None, None], sin[None, None]
        r0 = x0 * c - x1 * s
        r1 = x1 * c + x0 * s
        return jnp.stack([r0, r1], axis=-1).reshape(B, N_HEAD, T, HEAD_DIM)

    q, k = rope(q), rope(k)
    att = jnp.einsum('bhtd,bhsd->bhts', q, k) / math.sqrt(HEAD_DIM)
    mask = jnp.triu(jnp.ones((T, T), bool), 1)
    att = jnp.where(mask[None, None], -jnp.inf, att)
    att = jax.nn.softmax(att, axis=-1)
    y = jnp.einsum('bhts,bhsd->bhtd', att, v)
    y = y.transpose(0, 2, 1, 3).reshape(B, T, C)
    y = y @ p['w_proj'] + p['b_proj']
    x1_ = x + y
    h2 = ln(x1_, p['ln2_g'], p['ln2_b'])
    f = h2 @ p['w_fc'] + p['b_fc']
    f = 0.5 * f * (1.0 + jnp.tanh(math.sqrt(2.0 / math.pi) * (f + 0.044715 * f ** 3)))
    m = f @ p['w_fc2'] + p['b_fc2']
    return x1_ + m


if __name__ == "__main__":
    key = jax.random.PRNGKey(0)
    kx, kp = jax.random.split(key)
    x = jax.random.normal(kx, (B, T, C), jnp.float32)
    params = make_params(kp)

    cos32, sin32_signed, cos_half, sin_half = precompute_rope_tables()
    mask64 = build_mask64()
    wqkv_slab, wfc_slab, cslab, rope_tab = pack_inputs(params, cos32, sin32_signed)

    out = block_forward(x, wqkv_slab, wfc_slab, cslab, rope_tab, mask64)
    out = jax.block_until_ready(out)

    ref = ref_block(x, params, cos_half, sin_half)
    assert out.shape == (B, T, C)
    np.testing.assert_allclose(np.asarray(out), np.asarray(ref), rtol=2e-2, atol=2e-2)
    print("KERNEL_OK")
</pallas_src>

<mosaic_0001>
module attributes {stable_mosaic.version = 11 : i64} {
  func.func @block_kernel(%arg0: memref<16x32xf32, #tpu.memory_space<vmem>>, %arg1: memref<48x160xf32, #tpu.memory_space<vmem>>, %arg2: memref<48x128xf32, #tpu.memory_space<vmem>>, %arg3: memref<320x32xf32, #tpu.memory_space<vmem>>, %arg4: memref<32x64xf32, #tpu.memory_space<vmem>>, %arg5: memref<64x16xf32, #tpu.memory_space<vmem>>, %arg6: memref<16x32xf32, #tpu.memory_space<vmem>>) attributes {dimension_semantics = [], scalar_prefetch = 0 : i64, scratch_operands = 0 : i64, tpu.core_type = #tpu.core_type<tc>} {
    %c0 = arith.constant 0 : index
    %c0_0 = arith.constant 0 : index
    %0 = vector.load %arg0[%c0, %c0_0] : memref<16x32xf32, #tpu.memory_space<vmem>>, vector<16x32xf32>
    %c0_1 = arith.constant 0 : index
    %c0_2 = arith.constant 0 : index
    %1 = vector.load %arg3[%c0_1, %c0_2] : memref<320x32xf32, #tpu.memory_space<vmem>>, vector<128x32xf32>
    %c128 = arith.constant 128 : index
    %c0_3 = arith.constant 0 : index
    %2 = vector.load %arg3[%c128, %c0_3] : memref<320x32xf32, #tpu.memory_space<vmem>>, vector<32x32xf32>
    %c160 = arith.constant 160 : index
    %c0_4 = arith.constant 0 : index
    %3 = vector.load %arg3[%c160, %c0_4] : memref<320x32xf32, #tpu.memory_space<vmem>>, vector<16x32xf32>
    %c176 = arith.constant 176 : index
    %c0_5 = arith.constant 0 : index
    %4 = vector.load %arg3[%c176, %c0_5] : memref<320x32xf32, #tpu.memory_space<vmem>>, vector<16x32xf32>
    %c192 = arith.constant 192 : index
    %c0_6 = arith.constant 0 : index
    %5 = vector.load %arg3[%c192, %c0_6] : memref<320x32xf32, #tpu.memory_space<vmem>>, vector<16x32xf32>
    %c208 = arith.constant 208 : index
    %c0_7 = arith.constant 0 : index
    %6 = vector.load %arg3[%c208, %c0_7] : memref<320x32xf32, #tpu.memory_space<vmem>>, vector<16x32xf32>
    %c224 = arith.constant 224 : index
    %c0_8 = arith.constant 0 : index
    %7 = vector.load %arg3[%c224, %c0_8] : memref<320x32xf32, #tpu.memory_space<vmem>>, vector<16x32xf32>
    %c240 = arith.constant 240 : index
    %c0_9 = arith.constant 0 : index
    %8 = vector.load %arg3[%c240, %c0_9] : memref<320x32xf32, #tpu.memory_space<vmem>>, vector<16x32xf32>
    %c256 = arith.constant 256 : index
    %c0_10 = arith.constant 0 : index
    %9 = vector.load %arg3[%c256, %c0_10] : memref<320x32xf32, #tpu.memory_space<vmem>>, vector<64x32xf32>
    %c0_11 = arith.constant 0 : index
    %c0_12 = arith.constant 0 : index
    %10 = vector.load %arg1[%c0_11, %c0_12] : memref<48x160xf32, #tpu.memory_space<vmem>>, vector<32x160xf32>
    %c32 = arith.constant 32 : index
    %c0_13 = arith.constant 0 : index
    %11 = vector.load %arg1[%c32, %c0_13] : memref<48x160xf32, #tpu.memory_space<vmem>>, vector<16x160xf32>
    %c0_14 = arith.constant 0 : index
    %c0_15 = arith.constant 0 : index
    %12 = vector.load %arg2[%c0_14, %c0_15] : memref<48x128xf32, #tpu.memory_space<vmem>>, vector<32x128xf32>
    %c32_16 = arith.constant 32 : index
    %c0_17 = arith.constant 0 : index
    %13 = vector.load %arg2[%c32_16, %c0_17] : memref<48x128xf32, #tpu.memory_space<vmem>>, vector<16x128xf32>
    %c0_18 = arith.constant 0 : index
    %c0_19 = arith.constant 0 : index
    %14 = vector.load %arg4[%c0_18, %c0_19] : memref<32x64xf32, #tpu.memory_space<vmem>>, vector<16x64xf32>
    %c16 = arith.constant 16 : index
    %c0_20 = arith.constant 0 : index
    %15 = vector.load %arg4[%c16, %c0_20] : memref<32x64xf32, #tpu.memory_space<vmem>>, vector<16x64xf32>
    %c0_21 = arith.constant 0 : index
    %c0_22 = arith.constant 0 : index
    %16 = vector.load %arg5[%c0_21, %c0_22] : memref<64x16xf32, #tpu.memory_space<vmem>>, vector<64x16xf32>
    %cst = arith.constant dense<0.000000e+00> : vector<16xf32>
    %17 = vector.multi_reduction <add>, %0, %cst [1] : vector<16x32xf32> to vector<16xf32>
    %18 = vector.shape_cast %17 : vector<16xf32> to vector<16x1xf32>
    %cst_23 = arith.constant 3.200000e+01 : f32
    %19 = vector.broadcast %cst_23 : f32 to vector<16x1xf32>
    %20 = arith.divf %18, %19 : vector<16x1xf32>
    %21 = vector.broadcast %20 : vector<16x1xf32> to vector<16x32xf32>
    %22 = arith.subf %0, %21 : vector<16x32xf32>
    %23 = arith.mulf %22, %22 : vector<16x32xf32>
    %cst_24 = arith.constant dense<0.000000e+00> : vector<16xf32>
    %24 = vector.multi_reduction <add>, %23, %cst_24 [1] : vector<16x32xf32> to vector<16xf32>
    %25 = vector.shape_cast %24 : vector<16xf32> to vector<16x1xf32>
    %cst_25 = arith.constant 3.200000e+01 : f32
    %26 = vector.broadcast %cst_25 : f32 to vector<16x1xf32>
    %27 = arith.divf %25, %26 : vector<16x1xf32>
    %28 = vector.broadcast %20 : vector<16x1xf32> to vector<16x32xf32>
    %29 = arith.subf %0, %28 : vector<16x32xf32>
    %cst_26 = arith.constant 9.99999974E-6 : f32
    %30 = vector.broadcast %cst_26 : f32 to vector<16x1xf32>
    %31 = arith.addf %27, %30 : vector<16x1xf32>
    %32 = math.rsqrt %31 : vector<16x1xf32>
    %33 = vector.broadcast %32 : vector<16x1xf32> to vector<16x32xf32>
    %34 = arith.mulf %29, %33 : vector<16x32xf32>
    %35 = arith.mulf %34, %3 : vector<16x32xf32>
    %36 = arith.addf %35, %4 : vector<16x32xf32>
    %cst_27 = arith.constant dense<0.000000e+00> : vector<16x160xf32>
    %37 = tpu.matmul %36, %10, %cst_27 {dimension_numbers = #tpu.dot_dimension_numbers<[1], [0], [0], [1], [0, 0, 1, 1], [], []>} : vector<16x32xf32>, vector<32x160xf32>, vector<16x160xf32> -> vector<16x160xf32>
    %38 = arith.addf %37, %11 : vector<16x160xf32>
    %39 = vector.extract_strided_slice %38 {offsets = [0, 0], sizes = [16, 64], strides = [1, 1]} : vector<16x160xf32> to vector<16x64xf32>
    %40 = arith.mulf %39, %14 : vector<16x64xf32>
    %41 = vector.extract_strided_slice %38 {offsets = [0, 64], sizes = [16, 64], strides = [1, 1]} : vector<16x160xf32> to vector<16x64xf32>
    %42 = arith.mulf %41, %15 : vector<16x64xf32>
    %43 = arith.addf %40, %42 : vector<16x64xf32>
    %44 = vector.extract_strided_slice %43 {offsets = [0, 0], sizes = [16, 32], strides = [1, 1]} : vector<16x64xf32> to vector<16x32xf32>
    %45 = vector.extract_strided_slice %43 {offsets = [0, 32], sizes = [16, 32], strides = [1, 1]} : vector<16x64xf32> to vector<16x32xf32>
    %46 = vector.extract_strided_slice %38 {offsets = [0, 128], sizes = [16, 32], strides = [1, 1]} : vector<16x160xf32> to vector<16x32xf32>
    %47 = tpu.concatenate %44, %44, %44, %44 in 0 : vector<16x32xf32>, vector<16x32xf32>, vector<16x32xf32>, vector<16x32xf32> -> vector<64x32xf32>
    %48 = arith.mulf %47, %9 : vector<64x32xf32>
    %cst_28 = arith.constant dense<0.000000e+00> : vector<64x16xf32>
    %49 = tpu.matmul %48, %45, %cst_28 {dimension_numbers = #tpu.dot_dimension_numbers<[1], [1], [0], [0], [0, 0, 1, 0], [], []>} : vector<64x32xf32>, vector<16x32xf32>, vector<64x16xf32> -> vector<64x16xf32>
    %cst_29 = arith.constant 0.353553385 : f32
    %50 = vector.broadcast %cst_29 : f32 to vector<64x16xf32>
    %51 = arith.mulf %49, %50 : vector<64x16xf32>
    %52 = arith.addf %51, %16 : vector<64x16xf32>
    %cst_30 = arith.constant dense<0xFF800000> : vector<64xf32>
    %53 = vector.multi_reduction <maximumf>, %52, %cst_30 [1] : vector<64x16xf32> to vector<64xf32>
    %54 = vector.shape_cast %53 : vector<64xf32> to vector<64x1xf32>
    %55 = vector.broadcast %54 : vector<64x1xf32> to vector<64x16xf32>
    %56 = arith.subf %52, %55 : vector<64x16xf32>
    %57 = math.exp %56 : vector<64x16xf32>
    %cst_31 = arith.constant dense<0.000000e+00> : vector<64xf32>
    %58 = vector.multi_reduction <add>, %57, %cst_31 [1] : vector<64x16xf32> to vector<64xf32>
    %59 = vector.shape_cast %58 : vector<64xf32> to vector<64x1xf32>
    %60 = vector.broadcast %59 : vector<64x1xf32> to vector<64x16xf32>
    %61 = arith.divf %57, %60 : vector<64x16xf32>
    %cst_32 = arith.constant dense<0.000000e+00> : vector<64x32xf32>
    %62 = tpu.matmul %61, %46, %cst_32 {dimension_numbers = #tpu.dot_dimension_numbers<[1], [0], [0], [1], [0, 0, 1, 1], [], []>} : vector<64x16xf32>, vector<16x32xf32>, vector<64x32xf32> -> vector<64x32xf32>
    %63 = arith.mulf %62, %9 : vector<64x32xf32>
    %64 = vector.extract_strided_slice %63 {offsets = [0, 0], sizes = [16, 32], strides = [1, 1]} : vector<64x32xf32> to vector<16x32xf32>
    %65 = vector.extract_strided_slice %63 {offsets = [16, 0], sizes = [16, 32], strides = [1, 1]} : vector<64x32xf32> to vector<16x32xf32>
    %66 = arith.addf %64, %65 : vector<16x32xf32>
    %67 = vector.extract_strided_slice %63 {offsets = [32, 0], sizes = [16, 32], strides = [1, 1]} : vector<64x32xf32> to vector<16x32xf32>
    %68 = arith.addf %66, %67 : vector<16x32xf32>
    %69 = vector.extract_strided_slice %63 {offsets = [48, 0], sizes = [16, 32], strides = [1, 1]} : vector<64x32xf32> to vector<16x32xf32>
    %70 = arith.addf %68, %69 : vector<16x32xf32>
    %cst_33 = arith.constant dense<0.000000e+00> : vector<16x32xf32>
    %71 = tpu.matmul %70, %2, %cst_33 {dimension_numbers = #tpu.dot_dimension_numbers<[1], [0], [0], [1], [0, 0, 1, 1], [], []>} : vector<16x32xf32>, vector<32x32xf32>, vector<16x32xf32> -> vector<16x32xf32>
    %72 = arith.addf %71, %7 : vector<16x32xf32>
    %73 = arith.addf %0, %72 : vector<16x32xf32>
    %cst_34 = arith.constant dense<0.000000e+00> : vector<16xf32>
    %74 = vector.multi_reduction <add>, %73, %cst_34 [1] : vector<16x32xf32> to vector<16xf32>
    %75 = vector.shape_cast %74 : vector<16xf32> to vector<16x1xf32>
    %cst_35 = arith.constant 3.200000e+01 : f32
    %76 = vector.broadcast %cst_35 : f32 to vector<16x1xf32>
    %77 = arith.divf %75, %76 : vector<16x1xf32>
    %78 = vector.broadcast %77 : vector<16x1xf32> to vector<16x32xf32>
    %79 = arith.subf %73, %78 : vector<16x32xf32>
    %80 = arith.mulf %79, %79 : vector<16x32xf32>
    %cst_36 = arith.constant dense<0.000000e+00> : vector<16xf32>
    %81 = vector.multi_reduction <add>, %80, %cst_36 [1] : vector<16x32xf32> to vector<16xf32>
    %82 = vector.shape_cast %81 : vector<16xf32> to vector<16x1xf32>
    %cst_37 = arith.constant 3.200000e+01 : f32
    %83 = vector.broadcast %cst_37 : f32 to vector<16x1xf32>
    %84 = arith.divf %82, %83 : vector<16x1xf32>
    %85 = vector.broadcast %77 : vector<16x1xf32> to vector<16x32xf32>
    %86 = arith.subf %73, %85 : vector<16x32xf32>
    %cst_38 = arith.constant 9.99999974E-6 : f32
    %87 = vector.broadcast %cst_38 : f32 to vector<16x1xf32>
    %88 = arith.addf %84, %87 : vector<16x1xf32>
    %89 = math.rsqrt %88 : vector<16x1xf32>
    %90 = vector.broadcast %89 : vector<16x1xf32> to vector<16x32xf32>
    %91 = arith.mulf %86, %90 : vector<16x32xf32>
    %92 = arith.mulf %91, %5 : vector<16x32xf32>
    %93 = arith.addf %92, %6 : vector<16x32xf32>
    %cst_39 = arith.constant dense<0.000000e+00> : vector<16x128xf32>
    %94 = tpu.matmul %93, %12, %cst_39 {dimension_numbers = #tpu.dot_dimension_numbers<[1], [0], [0], [1], [0, 0, 1, 1], [], []>} : vector<16x32xf32>, vector<32x128xf32>, vector<16x128xf32> -> vector<16x128xf32>
    %95 = arith.addf %94, %13 : vector<16x128xf32>
    %cst_40 = arith.constant 5.000000e-01 : f32
    %96 = vector.broadcast %cst_40 : f32 to vector<16x128xf32>
    %97 = arith.mulf %96, %95 : vector<16x128xf32>
    %cst_41 = arith.constant 4.471500e-02 : f32
    %98 = vector.broadcast %cst_41 : f32 to vector<16x128xf32>
    %99 = arith.mulf %98, %95 : vector<16x128xf32>
    %100 = arith.mulf %99, %95 : vector<16x128xf32>
    %101 = arith.mulf %100, %95 : vector<16x128xf32>
    %102 = arith.addf %95, %101 : vector<16x128xf32>
    %cst_42 = arith.constant 0.797884583 : f32
    %103 = vector.broadcast %cst_42 : f32 to vector<16x128xf32>
    %104 = arith.mulf %103, %102 : vector<16x128xf32>
    %105 = math.tanh %104 : vector<16x128xf32>
    %cst_43 = arith.constant 1.000000e+00 : f32
    %106 = vector.broadcast %cst_43 : f32 to vector<16x128xf32>
    %107 = arith.addf %106, %105 : vector<16x128xf32>
    %108 = arith.mulf %97, %107 : vector<16x128xf32>
    %cst_44 = arith.constant dense<0.000000e+00> : vector<16x32xf32>
    %109 = tpu.matmul %108, %1, %cst_44 {dimension_numbers = #tpu.dot_dimension_numbers<[1], [0], [0], [1], [0, 0, 1, 1], [], []>} : vector<16x128xf32>, vector<128x32xf32>, vector<16x32xf32> -> vector<16x32xf32>
    %110 = arith.addf %109, %8 : vector<16x32xf32>
    %111 = arith.addf %73, %110 : vector<16x32xf32>
    %c0_45 = arith.constant 0 : index
    %c0_46 = arith.constant 0 : index
    %112 = vector.load %arg6[%c0_45, %c0_46] : memref<16x32xf32, #tpu.memory_space<vmem>>, vector<16x32xf32>
    tpu.vector_store %arg6[%c0_45, %c0_46], %111 {strides = array<i32>} : memref<16x32xf32, #tpu.memory_space<vmem>>, vector<16x32xf32>,
    return
  }
}

</mosaic_0001>

<bundles_post_ra>
// kernel: block_forward.1
= control target key start
LH: loop header
LB: loop body
LE: loop exit
PB: predicated region body
PF: predicated region fallthrough
CT: control target
= control target key end

     0   :  { %vm96_vm0 = vcmask 261120   ;;  %s1618_s0 = inlined_call_operand.vmem [shape: f32[16,32], index: 0, kind: input, shape index: {}]   ;;  %s1619_s1 = inlined_call_operand.vmem [shape: f32[48,160], index: 1, kind: input, shape index: {}]   ;;  %s1620_s2 = inlined_call_operand.vmem [shape: f32[48,128], index: 2, kind: input, shape index: {}]   ;;  %s1621_s3 = inlined_call_operand.vmem [shape: f32[320,32], index: 3, kind: input, shape index: {}]   ;;  %s1622_s4 = inlined_call_operand.vmem [shape: f32[32,64], index: 4, kind: input, shape index: {}]   ;;  %s1623_s5 = inlined_call_operand.vmem [shape: f32[64,16], index: 5, kind: input, shape index: {}]   ;;  %s1624_s6 = inlined_call_operand.hbm [shape: f32[16,32], index: 6, kind: output, shape index: {}]  }
   0x1   :  { %v1287_v0 = vld [vmem:[%s1618_s0] sm:$0xff]  ;;  %v1292_v1 = vld [vmem:[%s1618_s0 + $0x8] sm:$0xff] }
   0x2   :  { %11 = vsyncpa [#allocation3], 0  ;;  %v97_v2 = vsel %vm96_vm0, %v1287_v0, 0.0  ;;  %v100_v3 = vsel %vm96_vm0, %v1292_v1, 0.0  ;;  %v67_v14 = vld [vmem:[%s1619_s1 + $0x8] sm:$0xff]  ;;  %v69_v15 = vld [vmem:[%s1619_s1 + $0x18] sm:$0xff] }
   0x3   :  { %98 = vadd.xlane.f32.xlu0 %v97_v2  ;;  %v66_v16 = vld [vmem:[%s1619_s1] sm:$0xff]  ;;  %v1098_v17 = vpack.c.bf16 %v69_v15, %v67_v14  ;;  %v68_v18 = vld [vmem:[%s1619_s1 + $0x10] sm:$0xff]  ;;  %v71_v19 = vld [vmem:[%s1619_s1 + $0x28] sm:$0xff]  ;;  %v1243_v21 = vmov 0.0   ;;  %s1244_s20 = smov 64   ;;  %s1245_s17 = smov 96  }
   0x4   :  { %v73_v20 = vld [vmem:[%s1619_s1 + $0x38] sm:$0xff]  ;;  %198 = vmatprep.mubr.f32.mxu0 %v1243_v21  ;;  %v1100_v22 = vpack.c.bf16 %v68_v18, %v66_v16  ;;  %v70_v24 = vld [vmem:[%s1619_s1 + $0x20] sm:$0xff]  ;;  %v72_v25 = vld [vmem:[%s1619_s1 + $0x30] sm:$0xff]  ;;  %vm396_vm2 = vcmask 130048   ;;  %s1246_s29 = smov [#allocation2]  }
   0x5   :  { %v1102_v23 = vpack.c.bf16 %v73_v20, %v71_v19  ;;  %1099 = vmatprep.subr.bf16.mxu0 %v1098_v17  ;;  %v1104_v26 = vpack.c.bf16 %v72_v25, %v70_v24  ;;  %v86_v27 = vld [vmem:[%s1622_s4 + $0x10] sm:$0xff]  ;;  %v87_v28 = vld [vmem:[%s1622_s4 + $0x18] sm:$0xff]  ;;  %v46_v36 = vld [vmem:[%s1621_s3 + $0xa0] sm:$0xff]  ;;  %s924_s30 = sshll.u32 %s1246_s29, 4  ;;  %s925_s30 = int_to_ptr.vmem [resolvable:$true] %s924_s30 }
   0x6   :  { %1101 = vmatpush1.bf16.msra.mxu0 %v1100_v22  ;;  %v48_v38 = vld [vmem:[%s1621_s3 + $0xb0] sm:$0xff]  ;;  %v47_v41 = vld [vmem:[%s1621_s3 + $0xa8] sm:$0xff]  ;;  %v49_v44 = vld [vmem:[%s1621_s3 + $0xb8] sm:$0xff]  ;;  %s1219_s7 = scalar_lea.vmem %s925_s30, 256  ;;  %p1224_p1 = scmp.lt.s32.totalorder %s925_s30, %s925_s30 }
   0x7   :  { %101 = vadd.xlane.f32.xlu0 %v100_v3  ;;  %1103 = vmatprep.subr.bf16.mxu0 %v1102_v23  ;;  %v74_v47 = vld [vmem:[%s1619_s1 + $0x40] sm:$0xff]  ;;  %v76_v52 = vld [vmem:[%s1619_s1 + $0x50] sm:$0xff]  ;;  %v75_v53 = vld [vmem:[%s1619_s1 + $0x48] sm:$0xff]  ;;  %p1220_p0 = scmp.ne.s32.totalorder %s925_s30, %s1219_s7  ;;  %p1225_p2 = scmp.lt.s32.totalorder %s1219_s7, %s1219_s7 }
   0x8   :  { %v77_v55 = vld [vmem:[%s1619_s1 + $0x58] sm:$0xff]  ;;  %v84_v2 = vld [vmem:[%s1622_s4] sm:$0xff]  ;;  %vm1107_vm1 = vmpackc.low %vm96_vm0, %vm96_vm0 }
   0x9   :  { %v1380_v17 = vld [vmem:[%s1621_s3 + $0x108] sm:$0xff]  ;;  %v1385_v18 = vld [vmem:[%s1621_s3 + $0x110] sm:$0xff]  ;;  %v1398_v22 = vld [vmem:[%s1621_s3 + $0x120] sm:$0xff]  ;;  %p1226_p3 = por %p1225_p2, %p1224_p1 }
   0xa   :  { %1105 = vmatpush1.bf16.msra.mxu0 %v1104_v26  ;;  %v1406_v25 = vld [vmem:[%s1621_s3 + $0x128] sm:$0xff]  ;;  %v1412_v26 = vld [vmem:[%s1621_s3 + $0x130] sm:$0xff] }
   0xb   :  { %p1227_p4 = pnand %p1226_p3, %p1220_p0 }
  0x1d   :  { %215 = vrot.lane.b32.xlu0 %v86_v27, %s1244_s20 }
  0x90   :  { %v99_v4 = vpop.xlane.xlu0 %98 }
  0x91   :  { %v104_v5 = vmul.f32 0.03125, %v99_v4 }
  0x93   :  { %v106_v6 = vsub.f32 %v1287_v0, %v104_v5  ;;  %v85_v5 = vld [vmem:[%s1622_s4 + $0x8] sm:$0xff] }
  0x94   :  { %v102_v7 = vpop.xlane.xlu0 %101 }
  0x95   :  { %v105_v8 = vmul.f32 0.03125, %v102_v7  ;;  %v108_v9 = vmul.f32 %v106_v6, %v106_v6 }
  0x97   :  { %v107_v10 = vsub.f32 %v1292_v1, %v105_v8  ;;  %v110_v11 = vsel %vm96_vm0, %v108_v9, 0.0 }
  0x98   :  { %111 = vadd.xlane.f32.xlu1 %v110_v11  ;;  %v216_v49 = vpop.permute.xlu0 %215 }
  0x99   :  { %v109_v12 = vmul.f32 %v107_v10, %v107_v10 }
  0x9b   :  { %v113_v13 = vsel %vm96_vm0, %v109_v12, 0.0 }
  0x9c   :  { %114 = vadd.xlane.f32.xlu1 %v113_v13 }
  0xad   :  { %217 = vrot.lane.b32.xlu1 %v87_v28, %s1244_s20 }
 0x125   :  { %v112_v29 = vpop.xlane.xlu1 %111 }
 0x126   :  { %v116_v30 = vmul.f32 0.03125, %v112_v29  ;;  %v1420_v29 = vld [vmem:[%s1621_s3 + $0x138] sm:$0xff] }
 0x128   :  { %v118_v31 = vadd.f32 1e-05, %v116_v30 }
 0x129   :  { %v115_v32 = vpop.xlane.xlu1 %114 }
 0x12a   :  { %1175 = vrsqrt.f32 %v118_v31  ;;  %v117_v33 = vmul.f32 0.03125, %v115_v32  ;;  %v89_v32 = vld [vmem:[%s1623_s5 + $0x8] sm:$0xff] }
 0x12c   :  { %v119_v34 = vadd.f32 1e-05, %v117_v33 }
 0x12d   :  { %v218_v57 = vpop.permute.xlu1 %217 }
 0x12e   :  { %1177 = vrsqrt.f32 %v119_v34 }
 0x134   :  { %v1176_v35 = vpop.eup %1175 }
 0x135   :  { %v122_v37 = vmul.f32 %v1176_v35, %v106_v6  ;;  %v1371_v6 = vld [vmem:[%s1621_s3 + $0x100] sm:$0xff] }
 0x136   :  { %v88_v35 = vld [vmem:[%s1623_s5] sm:$0xff] }
 0x137   :  { %v124_v39 = vmul.f32 %v122_v37, %v46_v36 }
 0x138   :  { %v1178_v40 = vpop.eup %1177 }
 0x139   :  { %v126_v42 = vadd.f32 %v124_v39, %v48_v38  ;;  %v123_v43 = vmul.f32 %v1178_v40, %v107_v10 }
 0x13b   :  { %935 = vmatmul.mubr.msk.f32.vlgmr.msra.gmra.mrb[0].mxu0 %vm96_vm0, %v126_v42  ;;  %v125_v45 = vmul.f32 %v123_v43, %v47_v41  ;;  %v90_v43 = vld [vmem:[%s1623_s5 + $0x10] sm:$0xff] }
 0x13c   :  { %204 = vmatprep.mubr.f32.mxu0 %v1243_v21  ;;  %v1392_v21 = vld [vmem:[%s1621_s3 + $0x118] sm:$0xff] }
 0x13d   :  { %v127_v46 = vadd.f32 %v125_v45, %v49_v44 }
 0x13f   :  { %936 = vmatmul.mubr.msk.f32.gmra.mrb[2].mxu0 %vm96_vm0, %v127_v46  ;;  %v91_v46 = vld [vmem:[%s1623_s5 + $0x18] sm:$0xff] }
 0x20e   :  { %v200_v48 = vpop.f32.mrb[0].mxu0 }
 0x20f   :  { %v201_v50 = vadd.f32 %v200_v48, %v74_v47  ;;  %v202_v51 = vpop.f32.mrb[1].mxu0 }
 0x210   :  { %v203_v60 = vadd.f32 %v202_v51, %v75_v53  ;;  %v92_v51 = vld [vmem:[%s1623_s5 + $0x20] sm:$0xff] }
 0x211   :  { %v221_v54 = vmul.f32 %v216_v49, %v201_v50  ;;  %v211_v3 = vmul.f32 %v201_v50, %v84_v2 }
 0x212   :  { %v206_v56 = vpop.f32.mrb[2].mxu0 }
 0x213   :  { %v207_v58 = vadd.f32 %v206_v56, %v76_v52  ;;  %v208_v59 = vpop.f32.mrb[3].mxu0  ;;  %225 = vrot.lane.b32.xlu1 %v221_v54, %s1244_s20 }
 0x214   :  { %v209_v61 = vadd.f32 %v208_v59, %v77_v55  ;;  %v93_v55 = vld [vmem:[%s1623_s5 + $0x28] sm:$0xff] }
 0x215   :  { %v222_v62 = vmul.f32 %v218_v57, %v207_v58  ;;  %v212_v8 = vmul.f32 %v207_v58, %v85_v5 }
 0x216   :  { %v1112_v63 = vpack.c.bf16 %v209_v61, %v203_v60  ;;  %v94_v60 = vld [vmem:[%s1623_s5 + $0x30] sm:$0xff] }
 0x217   :  { %227 = vrot.lane.b32.xlu1 %v222_v62, %s1244_s20 }
 0x218   :  { %1113 = vmatprep.subr.bf16.mxu0 %v1112_v63 }
 0x219   :  { %1115 = vmatpush3.bf16.msra.mxu0 %v1112_v63 }
 0x285   :  { %v226_v4 = vpop.permute.xlu1 %225 }
 0x286   :  { %v231_v7 = vadd.f32 %v226_v4, %v211_v3  ;;  %v95_v3 = vld [vmem:[%s1623_s5 + $0x38] sm:$0xff] }
 0x288   :  { %v233_v9 = vmul.f32 %v231_v7, %v1371_v6  ;;  %v235_v20 = vmul.f32 %v231_v7, %v1385_v18  ;;  %v237_v24 = vmul.f32 %v231_v7, %v1398_v22  ;;  %v239_v28 = vmul.f32 %v231_v7, %v1412_v26 }
 0x289   :  { %v228_v10 = vpop.permute.xlu1 %227 }
 0x28a   :  { %v232_v11 = vadd.f32 %v228_v10, %v212_v8  ;;  %1013 = vmatprep.mubr.msk.f32.mxu1 %vm96_vm0, %v233_v9 }
 0x28c   :  { %v1170_v12 = vpack.i.bf16 %v232_v11, %v231_v7  ;;  %v234_v19 = vmul.f32 %v232_v11, %v1380_v17  ;;  %v236_v23 = vmul.f32 %v232_v11, %v1392_v21  ;;  %v238_v27 = vmul.f32 %v232_v11, %v1406_v25 }
 0x28d   :  { %v240_v30 = vmul.f32 %v232_v11, %v1420_v29 }
 0x28e   :  { %1171 = vrot.lane.b32.xlu0 %v1170_v12, %s1245_s17 }
 0x300   :  { %v1172_v13 = vpop.permute.xlu0 %1171 }
 0x301   :  { %v1174_v14 = vunpack.i.h.bf16 %v1172_v13  ;;  %v1173_v15 = vunpack.i.l.bf16 %v1172_v13 }
 0x303   :  { %v1106_v16 = vpack.c.bf16 %v1174_v14, %v1173_v15 }
 0x305   :  { %1108 = vmatprep.subr.msk.bf16.mxu1 %vm1107_vm1, %v1106_v16 }
 0x306   :  { %1111 = vmatpush3.bf16.xpose.msk.msra.mxu1 %vm1107_vm1, %v1106_v16 }
 0x30d   :  { %1014 = vmatmul.mubr.msk.f32.vlgmr.msra.gmra.mrb[0].mxu1 %vm96_vm0, %v234_v19 }
 0x30e   :  { %1016 = vmatprep.mubr.msk.f32.mxu1 %vm96_vm0, %v235_v20 }
 0x311   :  { %1017 = vmatmul.mubr.msk.f32.gmra.mrb[2].mxu1 %vm96_vm0, %v236_v23 }
 0x312   :  { %1019 = vmatprep.mubr.msk.f32.mxu1 %vm96_vm0, %v237_v24 }
 0x315   :  { %1020 = vmatmul.mubr.msk.f32.gmra.mrb[4].mxu1 %vm96_vm0, %v238_v27 }
 0x316   :  { %1022 = vmatprep.mubr.msk.f32.mxu1 %vm96_vm0, %v239_v28 }
 0x319   :  { %1023 = vmatmul.mubr.msk.f32.gmra.mrb[6].mxu1 %vm96_vm0, %v240_v30 }
 0x3e0   :  { %v1015_v31 = vpop.f32.mrb[0].mxu1 }
 0x3e1   :  { %v381_v33 = vmul.f32 0.35355338, %v1015_v31  ;;  %v341_v34 = vpop.f32.mrb[1].mxu1 }
 0x3e2   :  { %v380_v36 = vmul.f32 0.35355338, %v341_v34 }
 0x3e3   :  { %v389_v37 = vadd.f32 %v381_v33, %v89_v32 }
 0x3e4   :  { %v1018_v38 = vpop.f32.mrb[2].mxu1  ;;  %v388_v39 = vadd.f32 %v380_v36, %v88_v35 }
 0x3e5   :  { %v383_v40 = vmul.f32 0.35355338, %v1018_v38  ;;  %v351_v41 = vpop.f32.mrb[3].mxu1  ;;  %v400_v42 = vsel %vm396_vm2, %v389_v37, -inf }
 0x3e6   :  { %v382_v44 = vmul.f32 0.35355338, %v351_v41  ;;  %401 = vmax.xlane.f32.xlu0 %v400_v42  ;;  %v397_v45 = vsel %vm396_vm2, %v388_v39, -inf }
 0x3e7   :  { %398 = vmax.xlane.f32.xlu1 %v397_v45  ;;  %v391_v50 = vadd.f32 %v383_v40, %v91_v46 }
 0x3e8   :  { %v1021_v47 = vpop.f32.mrb[4].mxu1  ;;  %v390_v48 = vadd.f32 %v382_v44, %v90_v43 }
 0x3e9   :  { %v361_v49 = vpop.f32.mrb[5].mxu1  ;;  %v385_v52 = vmul.f32 0.35355338, %v1021_v47  ;;  %v406_v59 = vsel %vm396_vm2, %v391_v50, -inf }
 0x3ea   :  { %v384_v53 = vmul.f32 0.35355338, %v361_v49  ;;  %v403_v54 = vsel %vm396_vm2, %v390_v48, -inf }
 0x3eb   :  { %404 = vmax.xlane.f32.xlu0 %v403_v54  ;;  %v393_v2 = vadd.f32 %v385_v52, %v93_v55 }
 0x3ec   :  { %v1024_v56 = vpop.f32.mrb[6].mxu1  ;;  %v392_v57 = vadd.f32 %v384_v53, %v92_v51 }
 0x3ed   :  { %v371_v58 = vpop.f32.mrb[7].mxu1  ;;  %v387_v61 = vmul.f32 0.35355338, %v1024_v56  ;;  %v412_v5 = vsel %vm396_vm2, %v393_v2, -inf }
 0x3ee   :  { %v386_v62 = vmul.f32 0.35355338, %v371_v58  ;;  %v409_v63 = vsel %vm396_vm2, %v392_v57, -inf }
 0x3ef   :  { %407 = vmax.xlane.f32.xlu0 %v406_v59  ;;  %410 = vmax.xlane.f32.xlu1 %v409_v63  ;;  %v395_v8 = vadd.f32 %v387_v61, %v95_v3 }
 0x3f0   :  { %v394_v4 = vadd.f32 %v386_v62, %v94_v60 }
 0x3f1   :  { %v418_v9 = vsel %vm396_vm2, %v395_v8, -inf }
 0x3f2   :  { %v415_v7 = vsel %vm396_vm2, %v394_v4, -inf }
 0x3f3   :  { %413 = vmax.xlane.f32.xlu0 %v412_v5  ;;  %416 = vmax.xlane.f32.xlu1 %v415_v7 }
 0x3f7   :  { %419 = vmax.xlane.f32.xlu0 %v418_v9 }
 0x473   :  { %v402_v10 = vpop.xlane.xlu0 %401 }
 0x474   :  { %v422_v11 = vsub.f32 %v389_v37, %v402_v10  ;;  %v399_v12 = vpop.xlane.xlu1 %398 }
 0x475   :  { %v421_v13 = vsub.f32 %v388_v39, %v399_v12 }
 0x476   :  { %v431_v14 = vmul.f32 1.442695, %v422_v11 }
 0x477   :  { %v429_v15 = vmul.f32 1.442695, %v421_v13 }
 0x478   :  { %1179 = vpow2.f32 %v431_v14  ;;  %v405_v16 = vpop.xlane.xlu0 %404 }
 0x479   :  { %1181 = vpow2.f32 %v429_v15  ;;  %v423_v19 = vsub.f32 %v390_v48, %v405_v16 }
 0x47b   :  { %v433_v20 = vmul.f32 1.442695, %v423_v19 }
 0x47c   :  { %v408_v23 = vpop.xlane.xlu0 %407  ;;  %v411_v24 = vpop.xlane.xlu1 %410 }
 0x47d   :  { %1183 = vpow2.f32 %v433_v20  ;;  %v424_v27 = vsub.f32 %v391_v50, %v408_v23  ;;  %v425_v28 = vsub.f32 %v392_v57, %v411_v24  ;;  %v42_v24 = vld [vmem:[%s1621_s3 + $0x80] sm:$0xff] }
 0x47f   :  { %v435_v30 = vmul.f32 1.442695, %v424_v27  ;;  %v437_v31 = vmul.f32 1.442695, %v425_v28  ;;  %v43_v27 = vld [vmem:[%s1621_s3 + $0x88] sm:$0xff] }
 0x480   :  { %v414_v32 = vpop.xlane.xlu0 %413  ;;  %v417_v33 = vpop.xlane.xlu1 %416  ;;  %v1116_v28 = vpack.c.bf16 %v43_v27, %v42_v24  ;;  %v51_v24 = vld [vmem:[%s1621_s3 + $0xc8] sm:$0xff] }
 0x481   :  { %1185 = vpow2.f32 %v435_v30  ;;  %v426_v34 = vsub.f32 %v393_v2, %v414_v32  ;;  %v427_v35 = vsub.f32 %v394_v4, %v417_v33  ;;  %v44_v30 = vld [vmem:[%s1621_s3 + $0x90] sm:$0xff] }
 0x482   :  { %v1180_v36 = vpop.eup %1179  ;;  %1187 = vpow2.f32 %v437_v31  ;;  %1117 = vmatprep.subr.bf16.mxu0 %v1116_v28  ;;  %v45_v31 = vld [vmem:[%s1621_s3 + $0x98] sm:$0xff] }
 0x483   :  { %v1182_v37 = vpop.eup %1181  ;;  %v439_v38 = vmul.f32 1.442695, %v426_v34  ;;  %v441_v39 = vmul.f32 1.442695, %v427_v35  ;;  %v448_v40 = vsel %vm396_vm2, %v1180_v36, 0.0  ;;  %v1120_v32 = vpack.c.bf16 %v45_v31, %v44_v30  ;;  %v50_v30 = vld [vmem:[%s1621_s3 + $0xc0] sm:$0xff] }
 0x484   :  { %449 = vadd.xlane.f32.xlu0 %v448_v40  ;;  %v420_v41 = vpop.xlane.xlu0 %419  ;;  %v445_v42 = vsel %vm396_vm2, %v1182_v37, 0.0 }
 0x485   :  { %1189 = vpow2.f32 %v439_v38  ;;  %v428_v43 = vsub.f32 %v395_v8, %v420_v41  ;;  %446 = vadd.xlane.f32.xlu1 %v445_v42 }
 0x486   :  { %1191 = vpow2.f32 %v441_v39 }
 0x487   :  { %v1184_v44 = vpop.eup %1183  ;;  %v443_v45 = vmul.f32 1.442695, %v428_v43 }
 0x488   :  { %v451_v46 = vsel %vm396_vm2, %v1184_v44, 0.0 }
 0x489   :  { %1193 = vpow2.f32 %v443_v45  ;;  %452 = vadd.xlane.f32.xlu1 %v451_v46 }
 0x48b   :  { %v1186_v47 = vpop.eup %1185 }
 0x48c   :  { %v1188_v48 = vpop.eup %1187  ;;  %v454_v49 = vsel %vm396_vm2, %v1186_v47, 0.0 }
 0x48d   :  { %455 = vadd.xlane.f32.xlu0 %v454_v49  ;;  %v457_v50 = vsel %vm396_vm2, %v1188_v48, 0.0 }
 0x48e   :  { %458 = vadd.xlane.f32.xlu1 %v457_v50 }
 0x48f   :  { %v1190_v51 = vpop.eup %1189 }
 0x490   :  { %v1192_v52 = vpop.eup %1191  ;;  %v460_v53 = vsel %vm396_vm2, %v1190_v51, 0.0 }
 0x491   :  { %461 = vadd.xlane.f32.xlu0 %v460_v53  ;;  %v463_v54 = vsel %vm396_vm2, %v1192_v52, 0.0 }
 0x492   :  { %464 = vadd.xlane.f32.xlu1 %v463_v54 }
 0x493   :  { %v1194_v55 = vpop.eup %1193 }
 0x494   :  { %v466_v56 = vsel %vm396_vm2, %v1194_v55, 0.0 }
 0x495   :  { %467 = vadd.xlane.f32.xlu0 %v466_v56 }
 0x511   :  { %v450_v57 = vpop.xlane.xlu0 %449 }
 0x512   :  { %1195 = vrcp.f32 %v450_v57  ;;  %v447_v58 = vpop.xlane.xlu1 %446 }
 0x513   :  { %1197 = vrcp.f32 %v447_v58 }
 0x516   :  { %v453_v59 = vpop.xlane.xlu1 %452 }
 0x517   :  { %1199 = vrcp.f32 %v453_v59 }
 0x51a   :  { %v456_v60 = vpop.xlane.xlu0 %455 }
 0x51b   :  { %1201 = vrcp.f32 %v456_v60  ;;  %v459_v61 = vpop.xlane.xlu1 %458 }
 0x51c   :  { %v1196_v62 = vpop.eup %1195  ;;  %1203 = vrcp.f32 %v459_v61 }
 0x51d   :  { %v1198_v63 = vpop.eup %1197  ;;  %v472_v4 = vmul.f32 %v1196_v62, %v1180_v36 }
 0x51e   :  { %v462_v2 = vpop.xlane.xlu0 %461  ;;  %v470_v3 = vmul.f32 %v1198_v63, %v1182_v37 }
 0x51f   :  { %1205 = vrcp.f32 %v462_v2  ;;  %v465_v5 = vpop.xlane.xlu1 %464 }
 0x520   :  { %1207 = vrcp.f32 %v465_v5  ;;  %1029 = vmatprep.mubr.msk.f32.mxu0 %vm396_vm2, %v470_v3  ;;  %v78_v3 = vld [vmem:[%s1620_s2] sm:$0xff] }
 0x521   :  { %v1200_v7 = vpop.eup %1199  ;;  %1030 = vmatmul.mubr.msk.f32.vlgmr.msra.gmra.mrb[4].mxu0 %vm396_vm2, %v472_v4  ;;  %v79_v4 = vld [vmem:[%s1620_s2 + $0x8] sm:$0xff] }
 0x522   :  { %v468_v8 = vpop.xlane.xlu0 %467  ;;  %v474_v9 = vmul.f32 %v1200_v7, %v1184_v44  ;;  %1119 = vmatpush3.bf16.msra.mxu0 %v1116_v28  ;;  %v1124_v5 = vpack.c.bf16 %v79_v4, %v78_v3  ;;  %v80_v7 = vld [vmem:[%s1620_s2 + $0x10] sm:$0xff] }
 0x523   :  { %1209 = vrcp.f32 %v468_v8  ;;  %1121 = vmatprep.subr.bf16.mxu0 %v1120_v32  ;;  %v81_v8 = vld [vmem:[%s1620_s2 + $0x18] sm:$0xff] }
 0x524   :  { %1032 = vmatprep.mubr.msk.f32.mxu0 %vm396_vm2, %v474_v9  ;;  %v1128_v9 = vpack.c.bf16 %v81_v8, %v80_v7 }
 0x525   :  { %v1202_v10 = vpop.eup %1201 }
 0x526   :  { %v1204_v11 = vpop.eup %1203  ;;  %v476_v12 = vmul.f32 %v1202_v10, %v1186_v47  ;;  %1123 = vmatpush3.bf16.msra.mxu0 %v1120_v32  ;;  %v26_v10 = vld [vmem:[%s1621_s3] sm:$0xff] }
 0x527   :  { %v478_v13 = vmul.f32 %v1204_v11, %v1188_v48  ;;  %1125 = vmatprep.subr.bf16.mxu0 %v1124_v5  ;;  %v27_v11 = vld [vmem:[%s1621_s3 + $0x8] sm:$0xff] }
 0x528   :  { %1033 = vmatmul.mubr.msk.f32.gmra.mrb[6].mxu0 %vm396_vm2, %v476_v12  ;;  %v1132_v12 = vpack.c.bf16 %v27_v11, %v26_v10 }
 0x529   :  { %v1206_v14 = vpop.eup %1205  ;;  %1035 = vmatprep.mubr.msk.f32.mxu0 %vm396_vm2, %v478_v13 }
 0x52a   :  { %v1208_v15 = vpop.eup %1207  ;;  %v480_v16 = vmul.f32 %v1206_v14, %v1190_v51  ;;  %1133 = vmatprep.subr.bf16.mxu1 %v1132_v12 }
 0x52b   :  { %v482_v19 = vmul.f32 %v1208_v15, %v1192_v52  ;;  %1135 = vmatpush3.bf16.msra.mxu1 %v1132_v12 }
 0x52c   :  { %1036 = vmatmul.mubr.msk.f32.gmra.mrb[8].mxu0 %vm396_vm2, %v480_v16 }
 0x52d   :  { %v1210_v20 = vpop.eup %1209  ;;  %1038 = vmatprep.mubr.msk.f32.mxu0 %vm396_vm2, %v482_v19 }
 0x52e   :  { %v484_v23 = vmul.f32 %v1210_v20, %v1194_v55 }
 0x530   :  { %1039 = vmatmul.mubr.msk.f32.gmra.mrb[10].mxu0 %vm396_vm2, %v484_v23 }
 0x5f4   :  { %v1031_v33 = vpop.f32.mrb[4].mxu0 }
 0x5f5   :  { %v575_v34 = vpop.f32.mrb[5].mxu0  ;;  %v615_v36 = vmul.f32 %v1031_v33, %v1380_v17  ;;  %v52_v33 = vld [vmem:[%s1621_s3 + $0xd0] sm:$0xff] }
 0x5f6   :  { %v614_v39 = vmul.f32 %v575_v34, %v1371_v6 }
 0x5fb   :  { %v1034_v35 = vpop.f32.mrb[6].mxu0 }
 0x5fc   :  { %v617_v37 = vmul.f32 %v1034_v35, %v1392_v21  ;;  %v585_v38 = vpop.f32.mrb[7].mxu0  ;;  %v53_v35 = vld [vmem:[%s1621_s3 + $0xd8] sm:$0xff] }
 0x5fd   :  { %v616_v40 = vmul.f32 %v585_v38, %v1385_v18  ;;  %v55_v18 = vld [vmem:[%s1621_s3 + $0xe8] sm:$0xff]  ;;  %v28_v38 = vld [vmem:[%s1621_s3 + $0x10] sm:$0xff] }
 0x5fe   :  { %v623_v41 = vadd.f32 %v617_v37, %v615_v36 }
 0x5ff   :  { %v622_v42 = vadd.f32 %v616_v40, %v614_v39  ;;  %v1037_v43 = vpop.f32.mrb[8].mxu0  ;;  %v29_v39 = vld [vmem:[%s1621_s3 + $0x18] sm:$0xff] }
 0x600   :  { %v619_v44 = vmul.f32 %v1037_v43, %v1406_v25  ;;  %v595_v45 = vpop.f32.mrb[9].mxu0  ;;  %v1136_v40 = vpack.c.bf16 %v29_v39, %v28_v38 }
 0x601   :  { %v618_v46 = vmul.f32 %v595_v45, %v1398_v22  ;;  %v54_v22 = vld [vmem:[%s1621_s3 + $0xe0] sm:$0xff]  ;;  %v33_v45 = vld [vmem:[%s1621_s3 + $0x38] sm:$0xff] }
 0x602   :  { %v625_v47 = vadd.f32 %v623_v41, %v619_v44  ;;  %1137 = vmatprep.subr.bf16.mxu1 %v1136_v40  ;;  %v30_v41 = vld [vmem:[%s1621_s3 + $0x20] sm:$0xff]  ;;  %v32_v44 = vld [vmem:[%s1621_s3 + $0x30] sm:$0xff] }
 0x603   :  { %v624_v48 = vadd.f32 %v622_v42, %v618_v46  ;;  %v1040_v49 = vpop.f32.mrb[10].mxu0  ;;  %1139 = vmatpush3.bf16.msra.mxu1 %v1136_v40  ;;  %v31_v42 = vld [vmem:[%s1621_s3 + $0x28] sm:$0xff]  ;;  %v1144_v46 = vpack.c.bf16 %v33_v45, %v32_v44 }
 0x604   :  { %v621_v17 = vmul.f32 %v1040_v49, %v1420_v29  ;;  %v605_v50 = vpop.f32.mrb[11].mxu0  ;;  %v1140_v43 = vpack.c.bf16 %v31_v42, %v30_v41 }
 0x605   :  { %v620_v21 = vmul.f32 %v605_v50, %v1412_v26  ;;  %v37_v50 = vld [vmem:[%s1621_s3 + $0x58] sm:$0xff] }
 0x606   :  { %v627_v51 = vadd.f32 %v625_v47, %v621_v17  ;;  %1141 = vmatprep.subr.bf16.mxu1 %v1140_v43  ;;  %v34_v47 = vld [vmem:[%s1621_s3 + $0x40] sm:$0xff]  ;;  %v36_v17 = vld [vmem:[%s1621_s3 + $0x50] sm:$0xff] }
 0x607   :  { %v626_v6 = vadd.f32 %v624_v48, %v620_v21  ;;  %1143 = vmatpush3.bf16.msra.mxu1 %v1140_v43  ;;  %v35_v48 = vld [vmem:[%s1621_s3 + $0x48] sm:$0xff]  ;;  %v1152_v21 = vpack.c.bf16 %v37_v50, %v36_v17 }
 0x608   :  { %1145 = vmatprep.subr.bf16.mxu1 %v1144_v46  ;;  %v1148_v49 = vpack.c.bf16 %v35_v48, %v34_v47 }
 0x609   :  { %1049 = vmatprep.mubr.msk.f32.mxu0 %vm96_vm0, %v626_v6  ;;  %v39_v6 = vld [vmem:[%s1621_s3 + $0x68] sm:$0xff] }
 0x60a   :  { %1050 = vmatmul.mubr.msk.f32.vlgmr.msra.gmra.mrb[12].mxu0 %vm96_vm0, %v627_v51  ;;  %v38_v51 = vld [vmem:[%s1621_s3 + $0x60] sm:$0xff] }
 0x60b   :  { %1127 = vmatpush3.bf16.msra.mxu0 %v1124_v5  ;;  %1147 = vmatpush3.bf16.msra.mxu1 %v1144_v46 }
 0x60c   :  { %1129 = vmatprep.subr.bf16.mxu0 %v1128_v9  ;;  %1149 = vmatprep.subr.bf16.mxu1 %v1148_v49 }
 0x60f   :  { %1131 = vmatpush3.bf16.msra.mxu0 %v1128_v9  ;;  %1151 = vmatpush3.bf16.msra.mxu1 %v1148_v49 }
 0x610   :  { %1153 = vmatprep.subr.bf16.mxu1 %v1152_v21 }
 0x613   :  { %1155 = vmatpush3.bf16.msra.mxu1 %v1152_v21 }
 0x6dd   :  { %v1051_v25 = vpop.f32.mrb[12].mxu0 }
 0x6de   :  { %v706_v52 = vadd.f32 %v1051_v25, %v55_v18  ;;  %v700_v29 = vpop.f32.mrb[13].mxu0  ;;  %v1156_v18 = vpack.c.bf16 %v39_v6, %v38_v51  ;;  %v41_v25 = vld [vmem:[%s1621_s3 + $0x78] sm:$0xff] }
 0x6df   :  { %v701_v53 = vadd.f32 %v700_v29, %v54_v22  ;;  %v40_v22 = vld [vmem:[%s1621_s3 + $0x70] sm:$0xff]  ;;  %v83_v29 = vld [vmem:[%s1620_s2 + $0x28] sm:$0xff] }
 0x6e0   :  { %v1503_v26 = vadd.f32 %v706_v52, %v1292_v1  ;;  %1157 = vmatprep.subr.bf16.mxu1 %v1156_v18  ;;  %v1160_v52 = vpack.c.bf16 %v41_v25, %v40_v22 }
 0x6e1   :  { %v1506_v54 = vadd.f32 %v701_v53, %v1287_v0  ;;  %1159 = vmatpush3.bf16.msra.mxu1 %v1156_v18  ;;  %v82_v53 = vld [vmem:[%s1620_s2 + $0x20] sm:$0xff] }
 0x6e2   :  { %v714_v55 = vsel %vm96_vm0, %v1503_v26, 0.0  ;;  %1161 = vmatprep.subr.bf16.mxu1 %v1160_v52 }
 0x6e3   :  { %715 = vadd.xlane.f32.xlu0 %v714_v55  ;;  %v711_v56 = vsel %vm96_vm0, %v1506_v54, 0.0 }
 0x6e4   :  { %712 = vadd.xlane.f32.xlu1 %v711_v56 }
 0x6e5   :  { %1163 = vmatpush3.bf16.msra.mxu1 %v1160_v52 }
 0x770   :  { %v716_v57 = vpop.xlane.xlu0 %715 }
 0x771   :  { %v718_v58 = vmul.f32 0.03125, %v716_v57  ;;  %v713_v59 = vpop.xlane.xlu1 %712 }
 0x772   :  { %v717_v60 = vmul.f32 0.03125, %v713_v59 }
 0x773   :  { %v720_v61 = vsub.f32 %v1503_v26, %v718_v58 }
 0x774   :  { %v719_v1 = vsub.f32 %v1506_v54, %v717_v60 }
 0x775   :  { %v722_v62 = vmul.f32 %v720_v61, %v720_v61 }
 0x776   :  { %v721_v63 = vmul.f32 %v719_v1, %v719_v1 }
 0x777   :  { %v726_v0 = vsel %vm96_vm0, %v722_v62, 0.0 }
 0x778   :  { %727 = vadd.xlane.f32.xlu0 %v726_v0  ;;  %v723_v2 = vsel %vm96_vm0, %v721_v63, 0.0 }
 0x779   :  { %724 = vadd.xlane.f32.xlu1 %v723_v2 }
 0x805   :  { %v728_v13 = vpop.xlane.xlu0 %727 }
 0x806   :  { %v730_v14 = vmul.f32 0.03125, %v728_v13  ;;  %v725_v15 = vpop.xlane.xlu1 %724 }
 0x807   :  { %v729_v16 = vmul.f32 0.03125, %v725_v15  ;;  %v56_v15 = vld [vmem:[%s1621_s3 + $0xf0] sm:$0xff] }
 0x808   :  { %v732_v19 = vadd.f32 1e-05, %v730_v14  ;;  %v57_v14 = vld [vmem:[%s1621_s3 + $0xf8] sm:$0xff] }
 0x809   :  { %v731_v20 = vadd.f32 1e-05, %v729_v16 }
 0x80a   :  { %1211 = vrsqrt.f32 %v732_v19 }
 0x80b   :  { %1213 = vrsqrt.f32 %v731_v20 }
 0x814   :  { %v1212_v23 = vpop.eup %1211 }
 0x815   :  { %v1214_v27 = vpop.eup %1213  ;;  %v736_v28 = vmul.f32 %v1212_v23, %v720_v61 }
 0x816   :  { %v735_v31 = vmul.f32 %v1214_v27, %v719_v1 }
 0x817   :  { %v738_v32 = vmul.f32 %v736_v28, %v51_v24 }
 0x818   :  { %v737_v34 = vmul.f32 %v735_v31, %v50_v30 }
 0x819   :  { %v740_v37 = vadd.f32 %v738_v32, %v53_v35 }
 0x81a   :  { %v739_v36 = vadd.f32 %v737_v34, %v52_v33 }
 0x81c   :  { %1060 = vmatprep.mubr.msk.f32.mxu0 %vm96_vm0, %v739_v36 }
 0x81d   :  { %1061 = vmatmul.mubr.msk.f32.vlgmr.msra.gmra.mrb[14].mxu0 %vm96_vm0, %v740_v37 }
 0x8f0   :  { %v1062_v55 = vpop.f32.mrb[14].mxu0 }
 0x8f1   :  { %v819_v56 = vadd.f32 %v1062_v55, %v83_v29  ;;  %v813_v57 = vpop.f32.mrb[15].mxu0 }
 0x8f2   :  { %v814_v58 = vadd.f32 %v813_v57, %v82_v53 }
 0x8f3   :  { %v825_v59 = vmul.f32 0.044715, %v819_v56  ;;  %v823_v11 = vmul.f32 0.5, %v819_v56 }
 0x8f4   :  { %v824_v60 = vmul.f32 0.044715, %v814_v58  ;;  %v822_v9 = vmul.f32 0.5, %v814_v58 }
 0x8f5   :  { %v827_v61 = vmul.f32 %v825_v59, %v819_v56 }
 0x8f6   :  { %v826_v1 = vmul.f32 %v824_v60, %v814_v58 }
 0x8f7   :  { %v829_v62 = vmul.f32 %v827_v61, %v819_v56 }
 0x8f8   :  { %v828_v63 = vmul.f32 %v826_v1, %v814_v58 }
 0x8f9   :  { %v831_v0 = vadd.f32 %v829_v62, %v819_v56 }
 0x8fa   :  { %v830_v2 = vadd.f32 %v828_v63, %v814_v58 }
 0x8fb   :  { %v833_v3 = vmul.f32 0.7978846, %v831_v0 }
 0x8fc   :  { %v832_v4 = vmul.f32 0.7978846, %v830_v2 }
 0x8fd   :  { %1215 = vtanh.f32 %v833_v3 }
 0x8fe   :  { %1217 = vtanh.f32 %v832_v4 }
 0x907   :  { %v1216_v5 = vpop.eup %1215 }
 0x908   :  { %v1218_v7 = vpop.eup %1217  ;;  %v837_v8 = vadd.f32 1.0, %v1216_v5 }
 0x909   :  { %v836_v10 = vadd.f32 1.0, %v1218_v7 }
 0x90a   :  { %v839_v13 = vmul.f32 %v837_v8, %v823_v11 }
 0x90b   :  { %v838_v12 = vmul.f32 %v836_v10, %v822_v9 }
 0x90d   :  { %1095 = vmatprep.mubr.f32.mxu1 %v838_v12 }
 0x90e   :  { %1096 = vmatmul.mubr.f32.vlgmr.msra.gmra.mrb[8].mxu1 %v839_v13 }
 0x9e1   :  { %v1097_v16 = vpop.f32.mrb[8].mxu1 }
 0x9e2   :  { %v912_v19 = vadd.f32 %v1097_v16, %v57_v14  ;;  %v906_v20 = vpop.f32.mrb[9].mxu1 }
 0x9e3   :  { %v907_v23 = vadd.f32 %v906_v20, %v56_v15 }
 0x9e4   :  { %v916_v24 = vadd.f32 %v912_v19, %v1503_v26 }
 0x9e5   :  { %v915_v27 = vadd.f32 %v907_v23, %v1506_v54 }
 0x9e6   :  { %918 = vst.msk [vmem:[#allocation2 + $0x8] sm:$0xff] %vm96_vm0, %v916_v24 }
 0x9e7   :  { %917 = vst.msk [vmem:[#allocation2] sm:$0xff] %vm96_vm0, %v915_v27 }
 0x9e8   :  { %1230 = shalt.err (!%p1227_p4)
}
 0x9e9   :  { %s1231_s9 = scalar_lea.hbm %s1624_s6, 256 }
 0x9ea   :  { %p1232_p5 = scmp.ne.s32.totalorder %s1624_s6, %s1231_s9  ;;  %p1235_p6 = scmp.lt.u32.totalorder %s1231_s9, %s1624_s6 }
 0x9ec   :  { %p1237_p7 = pnand %p1235_p6, %p1232_p5 }
 0x9ee   :  { %1240 = shalt.err (!%p1237_p7)
}
 0x9ef   :  { %s1247_s1 = smov 128   ;;  %s1248_s14 = smov 8  }
 0x9f0   :  { %930 = dma.vmem_to_hbm [thread:$0]  %s925_s30, 256, %s1624_s6, [#allocation3], %s1247_s1, %s1247_s1, %s1248_s14  }
 0x9f1   :  { %1241 = dma.done.wait [#allocation3], 256  }
 0x9f2   :  { %1242 = vsyncadd [#allocation3], 4294967040 }
 0x9f3   :  { %934 = vsyncpa [#allocation3], 1 }

</bundles_post_ra>
